<compile_context>
chip_gen: v5e
topology: v5e:2x2
jax: 0.10.0
libtpu: 0.0.40
codegen_flags: <defaults>
</compile_context>

<pallas_src>
import math

import jax
import jax.numpy as jnp
from jax.experimental import pallas as pl
from jax.experimental.pallas import tpu as pltpu

_INV_SQRT2 = 1.0 / math.sqrt(2.0)


def _round_up(x, m):
    return ((x + m - 1) // m) * m


def _device_kind():
    try:
        return jax.devices()[0].device_kind.lower()
    except Exception:
        return ""


def _vmem_capacity_bytes(kind):
    try:
        cap = int(pltpu.get_tpu_info().vmem_capacity_bytes)
        if cap > 0:
            return cap
    except Exception:
        pass
    return (64 << 20) if "v7" in kind else (128 << 20)


def _device_defaults():
    """Generation-aware (tm, th, vmem_budget, vmem_capacity).

    Weights are re-streamed once per row block, so intensity ~= tm flop/byte.
    The row tile must clear peak_flops / HBM_BW to be MXU-bound:
    ~240 (v5e), ~650 (v6e), ~620 per-TC (v7x, 2 TCs share 3.2 TB/s).
    """
    kind = _device_kind()
    cap = _vmem_capacity_bytes(kind)
    if "v7" in kind:          # 64 MiB VMEM per TC: biggest tiles that fit
        tm, th, frac = 512, 512, 0.85
    elif "v6" in kind:        # 128 MiB VMEM: push intensity past ~650
        tm, th, frac = 1024, 1024, 0.75
    elif "v5" in kind:        # lower roofline threshold; big th cuts grid steps
        tm, th, frac = 512, 1024, 0.75
    else:                     # unknown / fallback
        tm, th, frac = 512, 512, 0.75
    return tm, th, int(cap * frac), cap


def _choose_th(H, th_target):
    """Hidden tile: prefer an exact divisor of H, multiple of 256 then 128."""
    th_target = max(128, th_target)
    for mult in (256, 128):
        cands = [t for t in range(mult, min(th_target, H) + 1, mult)
                 if H % t == 0]
        if cands:
            return max(cands)
    return _round_up(min(th_target, _round_up(H, 128)), 128)


def _vmem_bytes(tm, th, C, in_itemsize, out_itemsize):
    """Working-set estimate (double-buffered blocks + resident scratch)."""
    return (2 * tm * C * in_itemsize            # x row blocks
            + 2 * C * th * in_itemsize          # W_fc blocks
            + 2 * th * C * in_itemsize          # W_proj blocks
            + 2 * 8 * th * 4 + 2 * 8 * C * 4    # biases (sublane-padded)
            + tm * C * 4                        # f32 accumulator scratch
            + 2 * tm * C * out_itemsize)        # output blocks


def _mlp_kernel(x_ref, w1_ref, b1_ref, w2_ref, b2_ref, o_ref, acc_ref):
    # x_ref:  (tm, C)   w1_ref: (C, th)   b1_ref: (1, th) f32
    # w2_ref: (th, C)   b2_ref: (1, C) f32
    # o_ref:  (tm, C)   acc_ref: (tm, C) f32, resident across the H axis.
    j = pl.program_id(1)

    @pl.when(j == 0)
    def _init():
        # Seed the accumulator with the c_proj bias: removes the (tm, C)
        # bias add + extra accumulator read from the epilogue.
        acc_ref[...] = jnp.broadcast_to(b2_ref[...], acc_ref.shape)

    # c_fc partial for this hidden tile -> (tm, th); f32 MXU accumulation.
    h = jnp.dot(x_ref[...], w1_ref[...], preferred_element_type=jnp.float32)
    h = h + b1_ref[...]

    # Exact (erf) GELU, matching torch.nn.GELU() default; f32 elementwise.
    # TODO(synk): sweep a bf16 bias/GELU path on v6e/v7x (erf lowering kept f32
    # here for portability; the polynomial hides under the MXU at these tiles).
    h = 0.5 * h * (1.0 + jax.lax.erf(h * _INV_SQRT2))

    # c_proj partial for this hidden tile; accumulate in f32.
    acc_ref[...] += jnp.dot(h.astype(w2_ref.dtype), w2_ref[...],
                            preferred_element_type=jnp.float32)

    @pl.when(j == pl.num_programs(1) - 1)
    def _finalize():
        o_ref[...] = acc_ref[...].astype(o_ref.dtype)


def prepare_mlp_params(w_fc, b_fc, w_proj, b_proj, compute_dtype=jnp.bfloat16):
    """One-time weight prep hoisted out of the per-call forward path.

    Pre-casting the large weight matrices avoids an extra full f32->bf16
    HBM pass on every forward call (the in-kernel astype becomes a no-op).
    """
    cdt = jnp.dtype(compute_dtype)
    return (w_fc.astype(cdt), b_fc.astype(jnp.float32),
            w_proj.astype(cdt), b_proj.astype(jnp.float32))


def mlp_forward(x, w_fc, b_fc, w_proj, b_proj, *, tm=None, th=None,
                compute_dtype=jnp.bfloat16):
    """y = GELU(x @ w_fc + b_fc) @ w_proj + b_proj.

    x: (B, T, C); w_fc: (C, H); b_fc: (H,); w_proj: (H, C); b_proj: (C,).
    Weights stored pre-transposed as (in_features, out_features).
    """
    B, T, C = x.shape
    H = w_fc.shape[1]
    M = B * T
    out_dtype = x.dtype
    if compute_dtype is None:
        compute_dtype = x.dtype
    cdt = jnp.dtype(compute_dtype)
    ob = jnp.dtype(out_dtype).itemsize

    tm_d, th_d, vmem_budget, vmem_cap = _device_defaults()
    if tm is None:
        tm = tm_d
    if th is None:
        th = th_d

    # ---- tile sizes (MXU / (8,128)-aligned, clamped to problem & VMEM) -----
    row_align = max(8, 32 // cdt.itemsize)          # 8 for f32, 16 for bf16
    tm = max(row_align, min(tm, _round_up(M, row_align)))
    tm = _round_up(tm, row_align)
    th = _choose_th(H, th)

    # Shrink until the double-buffered working set fits the per-chip budget.
    while _vmem_bytes(tm, th, C, cdt.itemsize, ob) > vmem_budget:
        if tm > 256:
            tm = _round_up(max(row_align, tm // 2), row_align)
        elif th > 256:
            th = max(128, _round_up(th // 2, 128))
        elif tm > row_align:
            tm = _round_up(max(row_align, tm // 2), row_align)
        else:
            break

    M_pad = _round_up(M, tm)
    H_pad = _round_up(H, th)        # == H whenever th divides H (usual case)

    # ---- pad (zero padding is exact: GELU(0)=0, padded W_proj rows are 0) --
    x2 = x.reshape(M, C)
    if M_pad != M:
        x2 = jnp.pad(x2, ((0, M_pad - M), (0, 0)))
    if H_pad != H:
        w_fc = jnp.pad(w_fc, ((0, 0), (0, H_pad - H)))
        b_fc = jnp.pad(b_fc, (0, H_pad - H))
        w_proj = jnp.pad(w_proj, ((0, H_pad - H), (0, 0)))

    x2 = x2.astype(cdt)
    w_fc_c = w_fc.astype(cdt)        # no-op if prepared via prepare_mlp_params
    w_proj_c = w_proj.astype(cdt)
    b_fc2 = jnp.asarray(b_fc, jnp.float32).reshape(1, H_pad)
    b_proj2 = jnp.asarray(b_proj, jnp.float32).reshape(1, C)

    grid = (M_pad // tm, H_pad // th)

    # ---- VMEM limit: generation-aware budget, never below the actual need --
    est = _vmem_bytes(tm, th, C, cdt.itemsize, ob)
    vmem_limit = int(min(vmem_cap, max(vmem_budget, est + est // 4)))

    cost = pl.CostEstimate(
        flops=2 * 2 * M_pad * C * H_pad,            # two matmuls
        transcendentals=M_pad * H_pad,              # erf
        bytes_accessed=int(M_pad * C * cdt.itemsize                    # x
                           + grid[0] * 2 * C * H_pad * cdt.itemsize    # weights re-streamed
                           + (H_pad + C) * 4                           # biases
                           + M_pad * C * ob),                          # y
    )

    out = pl.pallas_call(
        _mlp_kernel,
        out_shape=jax.ShapeDtypeStruct((M_pad, C), out_dtype),
        grid_spec=pltpu.PrefetchScalarGridSpec(
            num_scalar_prefetch=0,
            grid=grid,
            in_specs=[
                pl.BlockSpec((tm, C), lambda i, j: (i, 0)),   # x row tile
                pl.BlockSpec((C, th), lambda i, j: (0, j)),   # W_fc streams over H
                pl.BlockSpec((1, th), lambda i, j: (0, j)),   # b_fc tile
                pl.BlockSpec((th, C), lambda i, j: (j, 0)),   # W_proj streams over H
                pl.BlockSpec((1, C), lambda i, j: (0, 0)),    # b_proj (resident)
            ],
            out_specs=pl.BlockSpec((tm, C), lambda i, j: (i, 0)),
            scratch_shapes=[pltpu.VMEM((tm, C), jnp.float32)],
        ),
        compiler_params=pltpu.CompilerParams(
            dimension_semantics=("parallel", "arbitrary"),
            vmem_limit_bytes=vmem_limit,
        ),
        cost_estimate=cost,
    )(x2, w_fc_c, b_fc2, w_proj_c, b_proj2)

    return out[:M].reshape(B, T, C)


def _reference(x, w_fc, b_fc, w_proj, b_proj):
    h = jnp.einsum("btc,ch->bth", x, w_fc) + b_fc
    h = 0.5 * h * (1.0 + jax.lax.erf(h / jnp.sqrt(2.0).astype(h.dtype)))
    return jnp.einsum("bth,hc->btc", h, w_proj) + b_proj


if __name__ == "__main__":
    # config: n_embd = 32  ->  hidden = 128
    B, T, C = 2, 8, 32
    H = 4 * C

    key = jax.random.PRNGKey(0)
    kx, k1, k2, k3, k4 = jax.random.split(key, 5)

    # Deterministic param init (PyTorch Linear-style uniform bounds),
    # stored pre-transposed as (in, out).
    bound_fc = 1.0 / math.sqrt(C)
    bound_pr = 1.0 / math.sqrt(H)
    w_fc = jax.random.uniform(k1, (C, H), jnp.float32, -bound_fc, bound_fc)
    b_fc = jax.random.uniform(k2, (H,), jnp.float32, -bound_fc, bound_fc)
    w_proj = jax.random.uniform(k3, (H, C), jnp.float32, -bound_pr, bound_pr)
    b_proj = jax.random.uniform(k4, (C,), jnp.float32, -bound_pr, bound_pr)

    x = jax.random.normal(kx, (B, T, C), jnp.float32)

    y_ref = _reference(x, w_fc, b_fc, w_proj, b_proj)

    # f32 compute path: tight correctness check against the reference.
    y_f32 = mlp_forward(x, w_fc, b_fc, w_proj, b_proj, compute_dtype=jnp.float32)
    y_f32 = jax.block_until_ready(y_f32)
    assert y_f32.shape == (B, T, C)
    assert jnp.allclose(y_f32, y_ref, atol=1e-5, rtol=1e-5), "f32 mismatch vs reference"

    # bf16 compute path (default, MXU-native), weights pre-cast once outside
    # the hot path (prepare_mlp_params); looser tolerance for bf16 rounding.
    pw_fc, pb_fc, pw_proj, pb_proj = prepare_mlp_params(
        w_fc, b_fc, w_proj, b_proj, compute_dtype=jnp.bfloat16)
    y_bf16 = mlp_forward(x, pw_fc, pb_fc, pw_proj, pb_proj,
                         compute_dtype=jnp.bfloat16)
    y_bf16 = jax.block_until_ready(y_bf16)
    assert y_bf16.shape == (B, T, C)
    assert jnp.allclose(y_bf16, y_ref, atol=5e-2, rtol=5e-2), "bf16 mismatch vs reference"

    print("KERNEL_OK")
</pallas_src>

<mosaic_0001>
module attributes {stable_mosaic.version = 11 : i64} {
  func.func @_mlp_kernel(%arg0: i32, %arg1: i32, %arg2: memref<16x32xf32, #tpu.memory_space<vmem>>, %arg3: memref<32x128xf32, #tpu.memory_space<vmem>>, %arg4: memref<1x128xf32, #tpu.memory_space<vmem>>, %arg5: memref<128x32xf32, #tpu.memory_space<vmem>>, %arg6: memref<1x32xf32, #tpu.memory_space<vmem>>, %arg7: memref<16x32xf32, #tpu.memory_space<vmem>>, %arg8: memref<16x32xf32, #tpu.memory_space<vmem>>) attributes {dimension_semantics = [#tpu.dimension_semantics<parallel>, #tpu.dimension_semantics<arbitrary>], iteration_bounds = array<i64: 1, 1>, scalar_prefetch = 0 : i64, scratch_operands = 1 : i64, tpu.core_type = #tpu.core_type<tc>, window_params = [{transform_indices = @transform_0, window_bounds = array<i64: 16, 32>}, {transform_indices = @transform_1, window_bounds = array<i64: 32, 128>}, {transform_indices = @transform_2, window_bounds = array<i64: 1, 128>}, {transform_indices = @transform_3, window_bounds = array<i64: 128, 32>}, {pipeline_mode = #tpu.pipeline_mode<synchronous>, transform_indices = @transform_4, window_bounds = array<i64: 1, 32>}, {transform_indices = @transform_5, window_bounds = array<i64: 16, 32>}]} {
    %c0_i32 = arith.constant 0 : i32
    %0 = arith.cmpi eq, %arg1, %c0_i32 : i32
    %1 = arith.extui %0 : i1 to i32
    %c0_i32_0 = arith.constant 0 : i32
    %2 = arith.cmpi ne, %1, %c0_i32_0 : i32
    scf.if %2 {
      %c0_18 = arith.constant 0 : index
      %c0_19 = arith.constant 0 : index
      %25 = vector.load %arg6[%c0_18, %c0_19] : memref<1x32xf32, #tpu.memory_space<vmem>>, vector<1x32xf32>
      %26 = vector.shape_cast %25 : vector<1x32xf32> to vector<1x32xf32>
      %27 = vector.broadcast %26 : vector<1x32xf32> to vector<16x32xf32>
      %c0_20 = arith.constant 0 : index
      %c0_21 = arith.constant 0 : index
      %28 = vector.load %arg8[%c0_20, %c0_21] : memref<16x32xf32, #tpu.memory_space<vmem>>, vector<16x32xf32>
      tpu.vector_store %arg8[%c0_20, %c0_21], %27 {strides = array<i32>} : memref<16x32xf32, #tpu.memory_space<vmem>>, vector<16x32xf32>,
    } else {
    }
    %c0 = arith.constant 0 : index
    %c0_1 = arith.constant 0 : index
    %3 = vector.load %arg2[%c0, %c0_1] : memref<16x32xf32, #tpu.memory_space<vmem>>, vector<16x32xf32>
    %c0_2 = arith.constant 0 : index
    %c0_3 = arith.constant 0 : index
    %4 = vector.load %arg3[%c0_2, %c0_3] : memref<32x128xf32, #tpu.memory_space<vmem>>, vector<32x128xf32>
    %cst = arith.constant dense<0.000000e+00> : vector<16x128xf32>
    %5 = tpu.matmul %3, %4, %cst {dimension_numbers = #tpu.dot_dimension_numbers<[1], [0], [0], [1], [0, 0, 1, 1], [], []>} : vector<16x32xf32>, vector<32x128xf32>, vector<16x128xf32> -> vector<16x128xf32>
    %c0_4 = arith.constant 0 : index
    %c0_5 = arith.constant 0 : index
    %6 = vector.load %arg4[%c0_4, %c0_5] : memref<1x128xf32, #tpu.memory_space<vmem>>, vector<1x128xf32>
    %7 = vector.broadcast %6 : vector<1x128xf32> to vector<16x128xf32>
    %8 = arith.addf %5, %7 : vector<16x128xf32>
    %cst_6 = arith.constant 5.000000e-01 : f32
    %9 = vector.broadcast %cst_6 : f32 to vector<16x128xf32>
    %10 = arith.mulf %9, %8 : vector<16x128xf32>
    %cst_7 = arith.constant 0.707106769 : f32
    %11 = vector.broadcast %cst_7 : f32 to vector<16x128xf32>
    %12 = arith.mulf %8, %11 : vector<16x128xf32>
    %13 = math.erf %12 : vector<16x128xf32>
    %cst_8 = arith.constant 1.000000e+00 : f32
    %14 = vector.broadcast %cst_8 : f32 to vector<16x128xf32>
    %15 = arith.addf %14, %13 : vector<16x128xf32>
    %16 = arith.mulf %10, %15 : vector<16x128xf32>
    %c0_9 = arith.constant 0 : index
    %c0_10 = arith.constant 0 : index
    %17 = vector.load %arg8[%c0_9, %c0_10] : memref<16x32xf32, #tpu.memory_space<vmem>>, vector<16x32xf32>
    %c0_11 = arith.constant 0 : index
    %c0_12 = arith.constant 0 : index
    %18 = vector.load %arg5[%c0_11, %c0_12] : memref<128x32xf32, #tpu.memory_space<vmem>>, vector<128x32xf32>
    %cst_13 = arith.constant dense<0.000000e+00> : vector<16x32xf32>
    %19 = tpu.matmul %16, %18, %cst_13 {dimension_numbers = #tpu.dot_dimension_numbers<[1], [0], [0], [1], [0, 0, 1, 1], [], []>} : vector<16x128xf32>, vector<128x32xf32>, vector<16x32xf32> -> vector<16x32xf32>
    %20 = arith.addf %17, %19 : vector<16x32xf32>
    %c0_14 = arith.constant 0 : index
    %c0_15 = arith.constant 0 : index
    %21 = vector.load %arg8[%c0_14, %c0_15] : memref<16x32xf32, #tpu.memory_space<vmem>>, vector<16x32xf32>
    tpu.vector_store %arg8[%c0_14, %c0_15], %20 {strides = array<i32>} : memref<16x32xf32, #tpu.memory_space<vmem>>, vector<16x32xf32>,
    %c0_i32_16 = arith.constant 0 : i32
    %22 = arith.cmpi eq, %arg1, %c0_i32_16 : i32
    %23 = arith.extui %22 : i1 to i32
    %c0_i32_17 = arith.constant 0 : i32
    %24 = arith.cmpi ne, %23, %c0_i32_17 : i32
    scf.if %24 {
      %c0_18 = arith.constant 0 : index
      %c0_19 = arith.constant 0 : index
      %25 = vector.load %arg8[%c0_18, %c0_19] : memref<16x32xf32, #tpu.memory_space<vmem>>, vector<16x32xf32>
      %c0_20 = arith.constant 0 : index
      %c0_21 = arith.constant 0 : index
      %26 = vector.load %arg7[%c0_20, %c0_21] : memref<16x32xf32, #tpu.memory_space<vmem>>, vector<16x32xf32>
      tpu.vector_store %arg7[%c0_20, %c0_21], %25 {strides = array<i32>} : memref<16x32xf32, #tpu.memory_space<vmem>>, vector<16x32xf32>,
    } else {
    }
    return
  }
  func.func @transform_0(%arg0: i32, %arg1: i32) -> (i32, i32) {
    %c0_i32 = arith.constant 0 : i32
    %c0_i32_0 = arith.constant 0 : i32
    return %arg0, %c0_i32 : i32, i32
  }
  func.func @transform_1(%arg0: i32, %arg1: i32) -> (i32, i32) {
    %c0_i32 = arith.constant 0 : i32
    %c0_i32_0 = arith.constant 0 : i32
    return %c0_i32, %arg1 : i32, i32
  }
  func.func @transform_2(%arg0: i32, %arg1: i32) -> (i32, i32) {
    %c0_i32 = arith.constant 0 : i32
    %c0_i32_0 = arith.constant 0 : i32
    return %c0_i32, %arg1 : i32, i32
  }
  func.func @transform_3(%arg0: i32, %arg1: i32) -> (i32, i32) {
    %c0_i32 = arith.constant 0 : i32
    %c0_i32_0 = arith.constant 0 : i32
    return %arg1, %c0_i32 : i32, i32
  }
  func.func @transform_4(%arg0: i32, %arg1: i32) -> (i32, i32) {
    %c0_i32 = arith.constant 0 : i32
    %c0_i32_0 = arith.constant 0 : i32
    %c0_i32_1 = arith.constant 0 : i32
    return %c0_i32, %c0_i32_0 : i32, i32
  }
  func.func @transform_5(%arg0: i32, %arg1: i32) -> (i32, i32) {
    %c0_i32 = arith.constant 0 : i32
    %c0_i32_0 = arith.constant 0 : i32
    return %arg0, %c0_i32 : i32, i32
  }
}

</mosaic_0001>

<bundles_post_ra>
// kernel: tpu_custom_call.1
= control target key start
LH: loop header
LB: loop body
LE: loop exit
PB: predicated region body
PF: predicated region fallthrough
CT: control target
= control target key end

     0   :  { %s431_s0 = inlined_call_operand.vmem [shape: f32[16,32], index: 0, kind: input, shape index: {}]   ;;  %s432_s1 = inlined_call_operand.vmem [shape: f32[32,128], index: 1, kind: input, shape index: {}]   ;;  %s433_s2 = inlined_call_operand.vmem [shape: f32[1,128], index: 2, kind: input, shape index: {}]   ;;  %s434_s3 = inlined_call_operand.vmem [shape: f32[128,32], index: 3, kind: input, shape index: {}]   ;;  %s435_s4 = inlined_call_operand.vmem [shape: f32[1,32], index: 4, kind: input, shape index: {}]   ;;  %s436_s5 = inlined_call_operand.hbm [shape: f32[16,32], index: 5, kind: output, shape index: {}]  }
   0x1   :  { %v37_v0 = vld [vmem:[%s432_s1 + $0x18] sm:$0xff]  ;;  %v36_v1 = vld [vmem:[%s432_s1 + $0x10] sm:$0xff]  ;;  %v35_v2 = vld [vmem:[%s432_s1 + $0x8] sm:$0xff] }
   0x2   :  { %61 = vmatpush.msra.mxu0 %v37_v0 }
   0x4   :  { %62 = vmatpush.msra.mxu0 %v36_v1 }
   0x5   :  { %10 = vsyncpa [#allocation4], 0  ;;  %v34_v3 = vld [vmem:[%s432_s1] sm:$0xff]  ;;  %vm29_vm0 = vcmask 261120   ;;  %v33_v5 = vld [vmem:[%s431_s0 + $0x8] sm:$0xff]  ;;  %s218_s13 = sshll.u32 %s436_s5, 4  ;;  %s219_s13 = int_to_ptr.hbm [resolvable:$true] %s218_s13 }
   0x6   :  { %63 = vmatpush.msra.mxu0 %v35_v2  ;;  %v32_v4 = vld [vmem:[%s431_s0] sm:$0xff]  ;;  %v177_v6 = vld [vmem:[%s434_s3 + $0x78] sm:$0xff]  ;;  %v176_v7 = vld [vmem:[%s434_s3 + $0x70] sm:$0xff]  ;;  %s286_s14 = smov 128   ;;  %s287_s15 = smov 8  }
   0x7   :  { %178 = vmatpush.msra.mxu1 %v177_v6  ;;  %234 = vmatpush.msra.mxu2 %v177_v6  ;;  %v175_v8 = vld [vmem:[%s434_s3 + $0x68] sm:$0xff]  ;;  %v174_v9 = vld [vmem:[%s434_s3 + $0x60] sm:$0xff]  ;;  %v173_v11 = vld [vmem:[%s434_s3 + $0x58] sm:$0xff] }
   0x8   :  { %64 = vmatpush.msra.mxu0 %v34_v3  ;;  %v253_v10 = vld [vmem:[%s433_s2] ss:$0 sm:$0xff]  ;;  %v172_v13 = vld [vmem:[%s434_s3 + $0x50] sm:$0xff]  ;;  %v171_v15 = vld [vmem:[%s434_s3 + $0x48] sm:$0xff] }
   0x9   :  { %230 = vmatmul.msk.f32.vlgmr.msra.gmra.mxu0 %vm29_vm0, %v32_v4  ;;  %179 = vmatpush.msra.mxu1 %v176_v7  ;;  %v170_v17 = vld [vmem:[%s434_s3 + $0x40] sm:$0xff]  ;;  %v169_v19 = vld [vmem:[%s434_s3 + $0x38] sm:$0xff]  ;;  %v168_v20 = vld [vmem:[%s434_s3 + $0x30] sm:$0xff] }
   0xa   :  { %235 = vmatpush.msra.mxu2 %v176_v7  ;;  %v167_v23 = vld [vmem:[%s434_s3 + $0x28] sm:$0xff]  ;;  %v166_v27 = vld [vmem:[%s434_s3 + $0x20] sm:$0xff]  ;;  %v165_v30 = vld [vmem:[%s434_s3 + $0x18] sm:$0xff] }
   0xb   :  { %180 = vmatpush.msra.mxu1 %v175_v8  ;;  %v164_v34 = vld [vmem:[%s434_s3 + $0x10] sm:$0xff]  ;;  %v163_v37 = vld [vmem:[%s434_s3 + $0x8] sm:$0xff]  ;;  %v162_v42 = vld [vmem:[%s434_s3] sm:$0xff] }
   0xc   :  { %236 = vmatpush.msra.mxu2 %v175_v8  ;;  %v254_v62 = vld [vmem:[%s435_s4] ss:$0 sm:$0xff]  ;;  %s285_s4 = smov [#allocation3]  }
   0xd   :  { %181 = vmatpush.msra.mxu1 %v174_v9  ;;  %30 = vst.msk [vmem:[#allocation2] sm:$0xff] %vm29_vm0, %v254_v62  ;;  %s216_s10 = sshll.u32 %s285_s4, 4  ;;  %s217_s10 = int_to_ptr.vmem [resolvable:$true] %s216_s10 }
   0xe   :  { %237 = vmatpush.msra.mxu2 %v174_v9  ;;  %31 = vst.msk [vmem:[#allocation2 + $0x8] sm:$0xff] %vm29_vm0, %v254_v62 }
   0xf   :  { %182 = vmatpush.msra.mxu1 %v173_v11 }
  0x10   :  { %238 = vmatpush.msra.mxu2 %v173_v11 }
  0x11   :  { %231 = vmatmul.msk.f32.gmra.mxu0 %vm29_vm0, %v33_v5  ;;  %183 = vmatpush.msra.mxu1 %v172_v13 }
  0x12   :  { %239 = vmatpush.msra.mxu2 %v172_v13 }
  0x13   :  { %184 = vmatpush.msra.mxu1 %v171_v15 }
  0x14   :  { %240 = vmatpush.msra.mxu2 %v171_v15 }
  0x15   :  { %185 = vmatpush.msra.mxu1 %v170_v17 }
  0x16   :  { %241 = vmatpush.msra.mxu2 %v170_v17 }
  0x17   :  { %186 = vmatpush.msra.mxu1 %v169_v19 }
  0x18   :  { %242 = vmatpush.msra.mxu2 %v169_v19 }
  0x19   :  { %187 = vmatpush.msra.mxu1 %v168_v20 }
  0x1a   :  { %243 = vmatpush.msra.mxu2 %v168_v20 }
  0x1b   :  { %188 = vmatpush.msra.mxu1 %v167_v23 }
  0x1c   :  { %244 = vmatpush.msra.mxu2 %v167_v23 }
  0x1d   :  { %189 = vmatpush.msra.mxu1 %v166_v27 }
  0x1e   :  { %245 = vmatpush.msra.mxu2 %v166_v27 }
  0x1f   :  { %190 = vmatpush.msra.mxu1 %v165_v30 }
  0x20   :  { %246 = vmatpush.msra.mxu2 %v165_v30 }
  0x21   :  { %191 = vmatpush.msra.mxu1 %v164_v34 }
  0x22   :  { %247 = vmatpush.msra.mxu2 %v164_v34 }
  0x23   :  { %192 = vmatpush.msra.mxu1 %v163_v37 }
  0x24   :  { %248 = vmatpush.msra.mxu2 %v163_v37 }
  0x25   :  { %193 = vmatpush.msra.mxu1 %v162_v42 }
  0x26   :  { %249 = vmatpush.msra.mxu2 %v162_v42 }
  0x86   :  { %v66_v12 = vpop.f32.mrf.mxu0 }
  0x87   :  { %v359_v14 = vadd.f32 %v253_v10, %v66_v12 }
  0x89   :  { %v365_v16 = vmul.f32 0.70710677, %v359_v14  ;;  %v72_v34 = vmul.f32 0.5, %v359_v14 }
  0x8b   :  { %v76_v18 = vmul.f32 %v365_v16, %v365_v16 }
  0x8d   :  { %v378_v21 = vmin.f32 %v76_v18, 16.0 }
  0x8e   :  { %v69_v22 = vpop.f32.mrf.mxu0 }
  0x8f   :  { %v78_v24 = vmul.f32 2.1237322e-06, %v378_v21  ;;  %v384_v25 = vadd.f32 %v253_v10, %v69_v22  ;;  %v89_v26 = vmul.f32 3.8918573e-05, %v378_v21 }
  0x91   :  { %v79_v28 = vadd.f32 0.00028619796, %v78_v24  ;;  %v391_v29 = vmul.f32 0.70710677, %v384_v25  ;;  %v90_v31 = vadd.f32 0.001143296, %v89_v26 }
  0x92   :  { %v73_v42 = vmul.f32 0.5, %v384_v25 }
  0x93   :  { %v80_v32 = vmul.f32 %v79_v28, %v378_v21  ;;  %v116_v33 = vmul.f32 %v391_v29, %v391_v29  ;;  %v91_v35 = vmul.f32 %v90_v31, %v378_v21 }
  0x95   :  { %v117_v36 = vmin.f32 %v116_v33, 16.0  ;;  %v92_v38 = vadd.f32 0.014752088, %v91_v35  ;;  %v81_v39 = vadd.f32 0.0036580483, %v80_v32 }
  0x97   :  { %v118_v40 = vmul.f32 2.1237322e-06, %v117_v36  ;;  %v129_v41 = vmul.f32 3.8918573e-05, %v117_v36  ;;  %v93_v43 = vmul.f32 %v92_v38, %v378_v21  ;;  %v82_v47 = vmul.f32 %v81_v39, %v378_v21 }
  0x99   :  { %v119_v44 = vadd.f32 0.00028619796, %v118_v40  ;;  %v130_v45 = vadd.f32 0.001143296, %v129_v41  ;;  %v94_v46 = vadd.f32 0.112945676, %v93_v43 }
  0x9a   :  { %v83_v54 = vadd.f32 0.05243302, %v82_v47 }
  0x9b   :  { %v120_v48 = vmul.f32 %v119_v44, %v117_v36  ;;  %v131_v49 = vmul.f32 %v130_v45, %v117_v36  ;;  %v95_v50 = vmul.f32 %v94_v46, %v378_v21  ;;  %v160_v45 = vld [vmem:[#allocation2] sm:$0xff] }
  0x9c   :  { %v84_v60 = vmul.f32 %v83_v54, %v378_v21 }
  0x9d   :  { %v132_v51 = vadd.f32 0.014752088, %v131_v49  ;;  %v121_v52 = vadd.f32 0.0036580483, %v120_v48  ;;  %v96_v53 = vadd.f32 0.4994258, %v95_v50 }
  0x9e   :  { %v85_v1 = vadd.f32 0.18741608, %v84_v60  ;;  %v161_v48 = vld [vmem:[#allocation2 + $0x8] sm:$0xff] }
  0x9f   :  { %v133_v55 = vmul.f32 %v132_v51, %v117_v36  ;;  %v97_v56 = vmul.f32 %v96_v53, %v378_v21  ;;  %v122_v58 = vmul.f32 %v121_v52, %v117_v36 }
  0xa0   :  { %v86_v6 = vmul.f32 %v85_v1, %v378_v21 }
  0xa1   :  { %v134_v57 = vadd.f32 0.112945676, %v133_v55  ;;  %v98_v59 = vadd.f32 1.0, %v97_v56  ;;  %v123_v0 = vadd.f32 0.05243302, %v122_v58 }
  0xa2   :  { %v87_v11 = vadd.f32 1.1283791, %v86_v6 }
  0xa3   :  { %v135_v61 = vmul.f32 %v134_v57, %v117_v36  ;;  %255 = vrcp.f32 %v98_v59  ;;  %v124_v5 = vmul.f32 %v123_v0, %v117_v36  ;;  %v110_v10 = vand.u32 2147483648, %v98_v59 }
  0xa4   :  { %v108_v13 = vand.u32 2147483647, %v98_v59  ;;  %vm104_vm2 = vweird.f32 %v98_v59  ;;  %v88_v22 = vmul.f32 %v87_v11, %v365_v16 }
  0xa5   :  { %v136_v63 = vadd.f32 0.4994258, %v135_v61  ;;  %v125_v9 = vadd.f32 0.18741608, %v124_v5  ;;  %v111_v19 = vor.u32 1.1754944e-38, %v110_v10 }
  0xa6   :  { %vm109_vm4 = vcmp.eq.f32.partialorder %v108_v13, 8.507059e+37 }
  0xa7   :  { %v137_v2 = vmul.f32 %v136_v63, %v117_v36  ;;  %v126_v18 = vmul.f32 %v125_v9, %v117_v36 }
  0xa9   :  { %v138_v3 = vadd.f32 1.0, %v137_v2  ;;  %v256_v4 = vpop.eup %255  ;;  %v127_v28 = vadd.f32 1.1283791, %v126_v18 }
  0xaa   :  { %v100_v7 = vmul.f32 %v256_v4, %v98_v59  ;;  %vm105_vm1 = vweird.f32 %v256_v4 }
  0xab   :  { %257 = vrcp.f32 %v138_v3  ;;  %vm106_vm3 = vmor %vm104_vm2, %vm105_vm1  ;;  %v150_v27 = vand.u32 2147483648, %v138_v3  ;;  %v148_v31 = vand.u32 2147483647, %v138_v3  ;;  %vm144_vm6 = vweird.f32 %v138_v3 }
  0xac   :  { %v101_v8 = vsub.f32 1.0, %v100_v7  ;;  %v128_v16 = vmul.f32 %v127_v28, %v391_v29 }
  0xad   :  { %v151_v36 = vor.u32 1.1754944e-38, %v150_v27  ;;  %vm149_vm8 = vcmp.eq.f32.partialorder %v148_v31, 8.507059e+37 }
  0xae   :  { %v102_v12 = vmul.f32 %v256_v4, %v101_v8 }
  0xb0   :  { %v103_v17 = vadd.f32 %v256_v4, %v102_v12 }
  0xb1   :  { %v258_v15 = vpop.eup %257 }
  0xb2   :  { %v140_v20 = vmul.f32 %v258_v15, %v138_v3  ;;  %v107_v23 = vsel %vm106_vm3, %v256_v4, %v103_v17  ;;  %vm145_vm5 = vweird.f32 %v258_v15 }
  0xb3   :  { %v112_v21 = vsel %vm109_vm4, %v111_v19, %v107_v23  ;;  %vm146_vm7 = vmor %vm144_vm6, %vm145_vm5 }
  0xb4   :  { %v141_v24 = vsub.f32 1.0, %v140_v20  ;;  %v113_v26 = vmul.f32 %v112_v21, %v88_v22 }
  0xb6   :  { %v142_v30 = vmul.f32 %v258_v15, %v141_v24  ;;  %v232_v32 = vclamps-f32 %v113_v26, 1.0 }
  0xb8   :  { %v143_v33 = vadd.f32 %v258_v15, %v142_v30  ;;  %v156_v35 = vadd.f32 1.0, %v232_v32 }
  0xba   :  { %v147_v37 = vsel %vm146_vm7, %v258_v15, %v143_v33  ;;  %v158_v38 = vmul.f32 %v156_v35, %v72_v34 }
  0xbb   :  { %v152_v39 = vsel %vm149_vm8, %v151_v36, %v147_v37 }
  0xbc   :  { %v153_v40 = vmul.f32 %v152_v39, %v128_v16  ;;  %194 = vmatmul.f32.vlgmr.msra.gmra.mxu1 %v158_v38 }
  0xbe   :  { %v233_v41 = vclamps-f32 %v153_v40, 1.0 }
  0xc0   :  { %v157_v43 = vadd.f32 1.0, %v233_v41 }
  0xc2   :  { %v159_v44 = vmul.f32 %v157_v43, %v73_v42 }
  0xc4   :  { %197 = vmatmul.f32.vlgmr.msra.gmra.mxu2 %v159_v44 }
 0x139   :  { %v195_v46 = vpop.f32.mrf.mxu1 }
 0x13a   :  { %v201_v14 = vadd.f32 %v195_v46, %v160_v45 }
 0x13c   :  { %203 = vst.msk [vmem:[#allocation2] sm:$0xff] %vm29_vm0, %v201_v14 }
 0x143   :  { %v208_v47 = vld [vmem:[#allocation2] sm:$0xff] }
 0x144   :  { %210 = vst.msk [vmem:[#allocation3] sm:$0xff] %vm29_vm0, %v208_v47 }
 0x147   :  { %v198_v29 = vpop.f32.mrf.mxu2 }
 0x148   :  { %v202_v49 = vadd.f32 %v198_v29, %v161_v48 }
 0x14a   :  { %204 = vst.msk [vmem:[#allocation2 + $0x8] sm:$0xff] %vm29_vm0, %v202_v49 }
 0x151   :  { %v209_v25 = vld [vmem:[#allocation2 + $0x8] sm:$0xff] }
 0x152   :  { %211 = vst.msk [vmem:[#allocation3 + $0x8] sm:$0xff] %vm29_vm0, %v209_v25 }
 0x153   :  { %224 = dma.vmem_to_hbm [thread:$0]  %s217_s10, 256, %s219_s13, [#allocation4], %s286_s14, %s286_s14, %s287_s15  }
 0x154   :  { %283 = dma.done.wait [#allocation4], 256  }
 0x155   :  { %284 = vsyncadd [#allocation4], 4294967040 }
 0x156   :  { %229 = vsyncpa [#allocation4], 1 }

</bundles_post_ra>
